<compile_context>
chip_gen: v7x
topology: tpu7x:2x2x1
jax: 0.10.0
libtpu: 0.0.40
codegen_flags: <defaults>
</compile_context>

<pallas_src>
import math

import jax
import jax.numpy as jnp
from jax.experimental import pallas as pl
from jax.experimental.pallas import tpu as pltpu

LANE = 128
SUBLANE = 8


def _round_up(n, m):
    return (n + m - 1) // m * m


def _cdiv(a, b):
    return -(-a // b)


def mlp_kernel(x_ref, w1_ref, b1_ref, w2t_ref, b2_ref, o_ref):
    # In-kernel cast (VPU, hidden under the x DMA); no-op on the f32 path.
    x = x_ref[...].astype(w1_ref.dtype)
    # linear1: [TB, D_in] @ [D_in, H_pad] -> f32 accumulate on the MXU.
    h = jnp.dot(x, w1_ref[...], preferred_element_type=jnp.float32)
    # bias + relu in f32 (padded hidden cols are exact zeros).
    h = jnp.maximum(h + b1_ref[...], 0.0)
    # linear2, transposed: [C_pad8, H_pad] contracted with [TB, H_pad] over the last
    # dim of both (q @ k^T pattern) -> out^T block [C_pad8, TB]. f32 accumulate.
    y_t = jax.lax.dot_general(
        w2t_ref[...],
        h.astype(w2t_ref.dtype),
        dimension_numbers=(((1,), (1,)), ((), ())),
        preferred_element_type=jnp.float32,
    )
    # bias-2 + sigmoid only over the (8-padded) class rows; lane-dense [C_pad8, TB] store.
    y_t = y_t + b2_ref[...]
    o_ref[...] = jax.nn.sigmoid(y_t).astype(o_ref.dtype)


def prepare_params(w1, b1, w2, b2, *, use_bf16=True):
    """One-time weight/bias padding + dtype casts (hoisted out of the forward call).

    w1: [D_in, H], b1: [1, H] (or [H]); w2: [H, C], b2: [1, C] (or [C]).
    """
    d_in, hidden = w1.shape
    num_classes = w2.shape[1]
    h_pad = _round_up(hidden, LANE)        # padded hidden only ever lives in VMEM
    c_pad = _round_up(num_classes, SUBLANE)  # classes -> one sublane tile (4 -> 8)
    wdt = jnp.bfloat16 if use_bf16 else jnp.float32

    w1p = jnp.zeros((d_in, h_pad), wdt).at[:, :hidden].set(w1.astype(wdt))
    b1p = (jnp.zeros((1, h_pad), jnp.float32)
           .at[:, :hidden].set(jnp.reshape(b1, (1, hidden)).astype(jnp.float32)))
    # Second layer stored transposed so the kernel writes out^T directly.
    w2tp = (jnp.zeros((c_pad, h_pad), wdt)
            .at[:num_classes, :hidden].set(jnp.transpose(w2).astype(wdt)))
    b2p = (jnp.zeros((c_pad, 1), jnp.float32)
           .at[:num_classes, 0].set(jnp.reshape(b2, (num_classes,)).astype(jnp.float32)))

    return dict(w1=w1p, b1=b1p, w2t=w2tp, b2=b2p,
                d_in=d_in, hidden=hidden, num_classes=num_classes)


def _plan_batch(batch, block_batch):
    """Pick the batch tile (lane dim of the transposed output -> multiple of 128)."""
    b_aligned = _round_up(batch, LANE)
    n_blocks = max(1, _cdiv(b_aligned, block_batch))
    # Keep >= 2 grid steps when the batch allows it so v7x's 2 TensorCores both get work
    # via dimension_semantics=("parallel",). v5e/v6e (1 TC) are unaffected.
    if b_aligned >= 2 * LANE:
        n_blocks = max(n_blocks, 2)
    tb = _round_up(_cdiv(b_aligned, n_blocks), LANE)
    b_pad = _round_up(batch, tb)
    return tb, b_pad


def multi_class_nn_forward(x, params, *, block_batch=2048):
    """Fused forward pass of MultiClassNN. x: [B, D_in]; returns [B, C] in x's dtype."""
    batch, d_in = x.shape
    assert d_in == params["d_in"]
    w1p, b1p, w2tp, b2p = params["w1"], params["b1"], params["w2t"], params["b2"]
    num_classes = params["num_classes"]
    h_pad = w1p.shape[1]
    c_pad = w2tp.shape[0]
    out_dtype = x.dtype

    tb, b_pad = _plan_batch(batch, block_batch)
    # Pad the batch only when tb doesn't divide it (a small copy; tb is chosen to keep
    # the padding fraction low for large batches).
    x_in = x if b_pad == batch else jnp.pad(x, ((0, b_pad - batch), (0, 0)))
    grid = (b_pad // tb,)

    # Actually-executed (padded) work, so XLA's surrounding schedule stays sensible.
    cost = pl.CostEstimate(
        flops=2 * b_pad * (d_in * h_pad + h_pad * c_pad),
        transcendentals=b_pad * c_pad,
        bytes_accessed=(
            b_pad * d_in * x_in.dtype.itemsize
            + c_pad * b_pad * jnp.dtype(out_dtype).itemsize
            + w1p.size * w1p.dtype.itemsize
            + w2tp.size * w2tp.dtype.itemsize
            + b1p.size * 4
            + b2p.size * 4
        ),
    )

    out_t = pl.pallas_call(
        mlp_kernel,
        out_shape=jax.ShapeDtypeStruct((c_pad, b_pad), out_dtype),
        grid=grid,
        in_specs=[
            pl.BlockSpec((tb, d_in), lambda i: (i, 0)),       # x: tiled on batch (d_in NOT padded)
            pl.BlockSpec((d_in, h_pad), lambda i: (0, 0)),    # w1: VMEM-resident
            pl.BlockSpec((1, h_pad), lambda i: (0, 0)),       # b1: VMEM-resident
            pl.BlockSpec((c_pad, h_pad), lambda i: (0, 0)),   # w2^T: VMEM-resident
            pl.BlockSpec((c_pad, 1), lambda i: (0, 0)),       # b2 (column): VMEM-resident
        ],
        # Transposed output: classes on sublanes, batch on lanes -> unmasked lane-dense vst.
        out_specs=pl.BlockSpec((c_pad, tb), lambda i: (0, i)),
        compiler_params=pltpu.CompilerParams(
            dimension_semantics=("parallel",),
        ),
        cost_estimate=cost,
    )(x_in, w1p, b1p, w2tp, b2p)

    # Compact slice + transpose (tiny: 8 x batch f32), instead of re-reading a
    # 128-lane-padded array.
    return jnp.transpose(out_t[:num_classes, :batch])


def init_linear_params(key, fan_in, fan_out, dtype=jnp.float32):
    """PyTorch-style default init: U(-1/sqrt(fan_in), 1/sqrt(fan_in)).
    Weight returned as [fan_in, fan_out] (already transposed for x @ W)."""
    kw, kb = jax.random.split(key)
    bound = 1.0 / math.sqrt(fan_in)
    w = jax.random.uniform(kw, (fan_in, fan_out), dtype, minval=-bound, maxval=bound)
    b = jax.random.uniform(kb, (1, fan_out), dtype, minval=-bound, maxval=bound)
    return w, b


if __name__ == "__main__":
    # Shapes implied by the module: x is [batch, input_size].
    batch, input_size, hidden_size, num_classes = 8, 16, 32, 4

    key = jax.random.PRNGKey(0)
    kx, k1, k2 = jax.random.split(key, 3)

    x = jax.random.normal(kx, (batch, input_size), jnp.float32)
    w1, b1 = init_linear_params(k1, input_size, hidden_size)
    w2, b2 = init_linear_params(k2, hidden_size, num_classes)

    # Pure-JAX f32 reference.
    ref = jax.nn.sigmoid(jnp.maximum(x @ w1 + b1, 0.0) @ w2 + b2)

    # bf16 MXU path (default): loose tolerance.
    params_bf16 = prepare_params(w1, b1, w2, b2, use_bf16=True)
    out = jax.block_until_ready(multi_class_nn_forward(x, params_bf16))
    assert out.shape == (batch, num_classes)
    assert jnp.allclose(out, ref, atol=1e-2, rtol=1e-2), (
        f"max abs err {jnp.max(jnp.abs(out - ref))}"
    )

    # Exact f32 path: tight tolerance.
    params_f32 = prepare_params(w1, b1, w2, b2, use_bf16=False)
    out_f32 = jax.block_until_ready(multi_class_nn_forward(x, params_f32))
    assert jnp.allclose(out_f32, ref, atol=1e-5, rtol=1e-5), (
        f"max abs err {jnp.max(jnp.abs(out_f32 - ref))}"
    )

    print("KERNEL_OK")
</pallas_src>

<mosaic_0001>
module attributes {stable_mosaic.version = 11 : i64} {
  func.func @mlp_kernel(%arg0: i32, %arg1: memref<128x16xf32, #tpu.memory_space<vmem>>, %arg2: memref<16x128xbf16, #tpu.memory_space<vmem>>, %arg3: memref<1x128xf32, #tpu.memory_space<vmem>>, %arg4: memref<8x128xbf16, #tpu.memory_space<vmem>>, %arg5: memref<8x1xf32, #tpu.memory_space<vmem>>, %arg6: memref<8x128xf32, #tpu.memory_space<vmem>>) attributes {dimension_semantics = [#tpu.dimension_semantics<parallel>], iteration_bounds = array<i64: 1>, scalar_prefetch = 0 : i64, scratch_operands = 0 : i64, tpu.core_type = #tpu.core_type<tc>, window_params = [{transform_indices = @transform_0, window_bounds = array<i64: 128, 16>}, {pipeline_mode = #tpu.pipeline_mode<synchronous>, transform_indices = @transform_1, window_bounds = array<i64: 16, 128>}, {pipeline_mode = #tpu.pipeline_mode<synchronous>, transform_indices = @transform_2, window_bounds = array<i64: 1, 128>}, {pipeline_mode = #tpu.pipeline_mode<synchronous>, transform_indices = @transform_3, window_bounds = array<i64: 8, 128>}, {pipeline_mode = #tpu.pipeline_mode<synchronous>, transform_indices = @transform_4, window_bounds = array<i64: 8, 1>}, {transform_indices = @transform_5, window_bounds = array<i64: 8, 128>}]} {
    %c0 = arith.constant 0 : index
    %c0_0 = arith.constant 0 : index
    %0 = vector.load %arg1[%c0, %c0_0] : memref<128x16xf32, #tpu.memory_space<vmem>>, vector<128x16xf32>
    %1 = arith.truncf %0 : vector<128x16xf32> to vector<128x16xbf16>
    %c0_1 = arith.constant 0 : index
    %c0_2 = arith.constant 0 : index
    %2 = vector.load %arg2[%c0_1, %c0_2] : memref<16x128xbf16, #tpu.memory_space<vmem>>, vector<16x128xbf16>
    %cst = arith.constant dense<0.000000e+00> : vector<128x128xf32>
    %3 = tpu.matmul %1, %2, %cst {dimension_numbers = #tpu.dot_dimension_numbers<[1], [0], [0], [1], [0, 0, 1, 1], [], []>} : vector<128x16xbf16>, vector<16x128xbf16>, vector<128x128xf32> -> vector<128x128xf32>
    %c0_3 = arith.constant 0 : index
    %c0_4 = arith.constant 0 : index
    %4 = vector.load %arg3[%c0_3, %c0_4] : memref<1x128xf32, #tpu.memory_space<vmem>>, vector<1x128xf32>
    %5 = vector.broadcast %4 : vector<1x128xf32> to vector<128x128xf32>
    %6 = arith.addf %3, %5 : vector<128x128xf32>
    %cst_5 = arith.constant 0.000000e+00 : f32
    %7 = vector.broadcast %cst_5 : f32 to vector<128x128xf32>
    %8 = arith.maximumf %6, %7 : vector<128x128xf32>
    %c0_6 = arith.constant 0 : index
    %c0_7 = arith.constant 0 : index
    %9 = vector.load %arg4[%c0_6, %c0_7] : memref<8x128xbf16, #tpu.memory_space<vmem>>, vector<8x128xbf16>
    %10 = arith.truncf %8 : vector<128x128xf32> to vector<128x128xbf16>
    %cst_8 = arith.constant dense<0.000000e+00> : vector<8x128xf32>
    %11 = tpu.matmul %9, %10, %cst_8 {dimension_numbers = #tpu.dot_dimension_numbers<[1], [1], [0], [0], [0, 0, 1, 0], [], []>} : vector<8x128xbf16>, vector<128x128xbf16>, vector<8x128xf32> -> vector<8x128xf32>
    %c0_9 = arith.constant 0 : index
    %c0_10 = arith.constant 0 : index
    %12 = vector.load %arg5[%c0_9, %c0_10] : memref<8x1xf32, #tpu.memory_space<vmem>>, vector<8x1xf32>
    %13 = vector.broadcast %12 : vector<8x1xf32> to vector<8x128xf32>
    %14 = arith.addf %11, %13 : vector<8x128xf32>
    %15 = arith.negf %14 : vector<8x128xf32>
    %16 = math.exp %15 : vector<8x128xf32>
    %cst_11 = arith.constant 1.000000e+00 : f32
    %17 = vector.broadcast %cst_11 : f32 to vector<8x128xf32>
    %18 = arith.addf %17, %16 : vector<8x128xf32>
    %19 = arith.divf %17, %18 : vector<8x128xf32>
    %c0_12 = arith.constant 0 : index
    %c0_13 = arith.constant 0 : index
    %20 = vector.load %arg6[%c0_12, %c0_13] : memref<8x128xf32, #tpu.memory_space<vmem>>, vector<8x128xf32>
    tpu.vector_store %arg6[%c0_12, %c0_13], %19 {strides = array<i32>} : memref<8x128xf32, #tpu.memory_space<vmem>>, vector<8x128xf32>,
    return
  }
  func.func @transform_0(%arg0: i32) -> (i32, i32) {
    %c0_i32 = arith.constant 0 : i32
    %c0_i32_0 = arith.constant 0 : i32
    return %arg0, %c0_i32 : i32, i32
  }
  func.func @transform_1(%arg0: i32) -> (i32, i32) {
    %c0_i32 = arith.constant 0 : i32
    %c0_i32_0 = arith.constant 0 : i32
    %c0_i32_1 = arith.constant 0 : i32
    return %c0_i32, %c0_i32_0 : i32, i32
  }
  func.func @transform_2(%arg0: i32) -> (i32, i32) {
    %c0_i32 = arith.constant 0 : i32
    %c0_i32_0 = arith.constant 0 : i32
    %c0_i32_1 = arith.constant 0 : i32
    return %c0_i32, %c0_i32_0 : i32, i32
  }
  func.func @transform_3(%arg0: i32) -> (i32, i32) {
    %c0_i32 = arith.constant 0 : i32
    %c0_i32_0 = arith.constant 0 : i32
    %c0_i32_1 = arith.constant 0 : i32
    return %c0_i32, %c0_i32_0 : i32, i32
  }
  func.func @transform_4(%arg0: i32) -> (i32, i32) {
    %c0_i32 = arith.constant 0 : i32
    %c0_i32_0 = arith.constant 0 : i32
    %c0_i32_1 = arith.constant 0 : i32
    return %c0_i32, %c0_i32_0 : i32, i32
  }
  func.func @transform_5(%arg0: i32) -> (i32, i32) {
    %c0_i32 = arith.constant 0 : i32
    %c0_i32_0 = arith.constant 0 : i32
    return %c0_i32, %arg0 : i32, i32
  }
}

</mosaic_0001>

<bundles_post_ra>
// kernel: tpu_custom_call.1
= control target key start
LH: loop header
LB: loop body
LE: loop exit
PB: predicated region body
PF: predicated region fallthrough
CT: control target
= control target key end

     0   :  { %vm61_vm0 = vcmask 130048   ;;  %s499_s0 = inlined_call_operand.vmem [shape: f32[128,16], index: 0, kind: input, shape index: {}]   ;;  %s500_s1 = inlined_call_operand.vmem [shape: bf16[16,128], index: 1, kind: input, shape index: {}]   ;;  %s501_s2 = inlined_call_operand.vmem [shape: f32[1,128], index: 2, kind: input, shape index: {}]   ;;  %s502_s3 = inlined_call_operand.vmem [shape: bf16[8,128], index: 3, kind: input, shape index: {}]   ;;  %s503_s4 = inlined_call_operand.vmem [shape: f32[8,1], index: 4, kind: input, shape index: {}]   ;;  %s504_s5 = inlined_call_operand.hbm [shape: f32[8,128], index: 5, kind: output, shape index: {}]  }
   0x1   :  { %v347_v0 = vld [vmem:[%s500_s1] sm:$0xff]   ;;  %v23_v2 = vld [vmem:[%s499_s0 + $0x8] sm:$0xff]  ;;  %v24_v3 = vld [vmem:[%s499_s0 + $0x10] sm:$0xff] }
   0x2   :  { %v22_v1 = vld [vmem:[%s499_s0] sm:$0xff]  ;;  %304 = vmatprep.subr.bf16.mxu0 %v347_v0  ;;  %v25_v5 = vld [vmem:[%s499_s0 + $0x18] sm:$0xff]  ;;  %v27_v7 = vld [vmem:[%s499_s0 + $0x28] sm:$0xff] }
   0x3   :  { %v38_v4 = vpack.c.bf16 %v23_v2, %v22_v1  ;;  %v26_v6 = vld [vmem:[%s499_s0 + $0x20] sm:$0xff]  ;;  %305 = vmatpush3.bf16.msra.mxu0 %v347_v0  ;;  %v39_v8 = vpack.c.bf16 %v25_v5, %v24_v3 }
   0x4   :  { %v40_v9 = vpack.c.bf16 %v27_v7, %v26_v6 }
   0x5   :  { %306 = vmatprep.mubr.msk.bf16.mxu0 %vm61_vm0, %v38_v4 }
   0x6   :  { %307 = vmatmul.mubr.msk.bf16.vlgmr.msra.gmra.mrb[0].mxu0 %vm61_vm0, %v39_v8 }
   0x7   :  { %10 = vsyncpa [#allocation3], 0  ;;  %310 = vmatprep.mubr.msk.bf16.mxu0 %vm61_vm0, %v40_v9  ;;  %v28_v10 = vld [vmem:[%s499_s0 + $0x30] sm:$0xff]  ;;  %v29_v11 = vld [vmem:[%s499_s0 + $0x38] sm:$0xff]  ;;  %v376_v25 = vmov 0.0   ;;  %vm377_vm1 = vmmov 0  }
   0x8   :  { %v30_v12 = vld [vmem:[%s499_s0 + $0x40] sm:$0xff]  ;;  %v31_v13 = vld [vmem:[%s499_s0 + $0x48] sm:$0xff]  ;;  %v41_v14 = vpack.c.bf16 %v29_v11, %v28_v10  ;;  %v32_v16 = vld [vmem:[%s499_s0 + $0x50] sm:$0xff]  ;;  %322 = vmatprep.subr.bf16.mxu1 %v376_v25  ;;  %338 = vmatprep.mubr.msk.bf16.mxu1 %vm377_vm1, %v376_v25  ;;  %v378_v27 = vmov 0  }
   0x9   :  { %v42_v15 = vpack.c.bf16 %v31_v13, %v30_v12  ;;  %v33_v17 = vld [vmem:[%s499_s0 + $0x58] sm:$0xff]  ;;  %v34_v18 = vld [vmem:[%s499_s0 + $0x60] sm:$0xff]  ;;  %v35_v19 = vld [vmem:[%s499_s0 + $0x68] sm:$0xff]  ;;  %346 = vset.pattern.permute.xlu0 %v378_v27 }
   0xa   :  { %v43_v20 = vpack.c.bf16 %v33_v17, %v32_v16  ;;  %v44_v21 = vpack.c.bf16 %v35_v19, %v34_v18  ;;  %v36_v22 = vld [vmem:[%s499_s0 + $0x70] sm:$0xff]  ;;  %v37_v23 = vld [vmem:[%s499_s0 + $0x78] sm:$0xff]  ;;  %v208_v26 = vld [vmem:[%s503_s4] sm:$0xff]  ;;  %s379_s4 = smov [#allocation2]  }
   0xb   :  { %v45_v24 = vpack.c.bf16 %v37_v23, %v36_v22  ;;  %211 = vperm.xlu0 %346, %v208_v26   ;;  %v275_v28 = vld [vmem:[%s501_s2] ss:$0 sm:$0xff]  ;;  %s267_s29 = sshll.u32 %s379_s4, 4  ;;  %s268_s29 = int_to_ptr.vmem [resolvable:$true] %s267_s29 }
   0xc   :  { %s352_s30 = scalar_lea.vmem %s268_s29, 128  ;;  %p357_p1 = scmp.lt.s32.totalorder %s268_s29, %s268_s29 }
   0xd   :  { %p353_p0 = scmp.ne.s32.totalorder %s268_s29, %s352_s30  ;;  %p358_p2 = scmp.lt.s32.totalorder %s352_s30, %s352_s30 }
   0xe   :  { %311 = vmatmul.mubr.msk.bf16.gmra.mrb[4].mxu0 %vm61_vm0, %v41_v14 }
   0xf   :  { %314 = vmatprep.mubr.msk.bf16.mxu0 %vm61_vm0, %v42_v15  ;;  %p359_p3 = por %p358_p2, %p357_p1 }
  0x11   :  { %p360_p4 = pnand %p359_p3, %p353_p0 }
  0x16   :  { %315 = vmatmul.mubr.msk.bf16.gmra.mrb[8].mxu0 %vm61_vm0, %v43_v20 }
  0x17   :  { %318 = vmatprep.mubr.msk.bf16.mxu0 %vm61_vm0, %v44_v21  ;;  %v199_v21 = vld [vmem:[%s502_s3] sm:$0xf] }
  0x1e   :  { %319 = vmatmul.mubr.msk.bf16.gmra.mrb[12].mxu0 %vm61_vm0, %v45_v24 }
  0x8a   :  { %v212_v22 = vpop.permute.xlu0 %211 }
  0xd9   :  { %v308_v29 = vpop.f32.mrb[0].mxu0 }
  0xda   :  { %v129_v30 = vadd.f32 %v308_v29, %v275_v28  ;;  %v120_v31 = vpop.f32.mrb[1].mxu0 }
  0xdb   :  { %v121_v32 = vadd.f32 %v275_v28, %v120_v31  ;;  %v309_v33 = vpop.f32.mrb[2].mxu0 }
  0xdc   :  { %v132_v34 = vadd.f32 %v309_v33, %v275_v28  ;;  %v123_v35 = vpop.f32.mrb[3].mxu0  ;;  %v185_v37 = vmax.f32 %v129_v30, 0.0 }
  0xdd   :  { %v124_v36 = vadd.f32 %v275_v28, %v123_v35  ;;  %v183_v39 = vmax.f32 %v121_v32, 0.0 }
  0xde   :  { %v186_v38 = vmax.f32 %v132_v34, 0.0 }
  0xdf   :  { %v184_v40 = vmax.f32 %v124_v36, 0.0 }
  0xe0   :  { %v201_v41 = vpack.c.bf16 %v186_v38, %v185_v37 }
  0xe1   :  { %v200_v42 = vpack.c.bf16 %v184_v40, %v183_v39  ;;  %v312_v43 = vpop.f32.mrb[4].mxu0 }
  0xe2   :  { %v145_v44 = vadd.f32 %v312_v43, %v275_v28  ;;  %v136_v45 = vpop.f32.mrb[5].mxu0 }
  0xe3   :  { %323 = vmatpush3.bf16.xpose.msra.mxu1 %v200_v42  ;;  %v137_v46 = vadd.f32 %v275_v28, %v136_v45  ;;  %v313_v47 = vpop.f32.mrb[6].mxu0 }
  0xe4   :  { %v189_v48 = vmax.f32 %v145_v44, 0.0  ;;  %v148_v49 = vadd.f32 %v313_v47, %v275_v28  ;;  %v139_v50 = vpop.f32.mrb[7].mxu0  ;;  %324 = vmatprep.subr.bf16.mxu1 %v376_v25 }
  0xe5   :  { %v187_v51 = vmax.f32 %v137_v46, 0.0  ;;  %v140_v52 = vadd.f32 %v275_v28, %v139_v50 }
  0xe6   :  { %v190_v53 = vmax.f32 %v148_v49, 0.0 }
  0xe7   :  { %v188_v54 = vmax.f32 %v140_v52, 0.0 }
  0xe8   :  { %v203_v55 = vpack.c.bf16 %v190_v53, %v189_v48 }
  0xe9   :  { %v202_v56 = vpack.c.bf16 %v188_v54, %v187_v51  ;;  %v316_v57 = vpop.f32.mrb[8].mxu0 }
  0xea   :  { %v161_v58 = vadd.f32 %v316_v57, %v275_v28  ;;  %v152_v59 = vpop.f32.mrb[9].mxu0 }
  0xeb   :  { %325 = vmatpush3.bf16.xpose.msra.mxu1 %v201_v41  ;;  %v153_v60 = vadd.f32 %v275_v28, %v152_v59  ;;  %v317_v61 = vpop.f32.mrb[10].mxu0 }
  0xec   :  { %326 = vmatprep.subr.bf16.mxu1 %v376_v25  ;;  %v193_v62 = vmax.f32 %v161_v58, 0.0  ;;  %v164_v63 = vadd.f32 %v317_v61, %v275_v28  ;;  %v155_v0 = vpop.f32.mrb[11].mxu0 }
  0xed   :  { %v191_v1 = vmax.f32 %v153_v60, 0.0  ;;  %v156_v2 = vadd.f32 %v275_v28, %v155_v0 }
  0xee   :  { %v194_v3 = vmax.f32 %v164_v63, 0.0 }
  0xef   :  { %v192_v4 = vmax.f32 %v156_v2, 0.0 }
  0xf0   :  { %v205_v5 = vpack.c.bf16 %v194_v3, %v193_v62 }
  0xf1   :  { %v204_v6 = vpack.c.bf16 %v192_v4, %v191_v1  ;;  %v320_v7 = vpop.f32.mrb[12].mxu0 }
  0xf2   :  { %v177_v8 = vadd.f32 %v320_v7, %v275_v28  ;;  %v168_v9 = vpop.f32.mrb[13].mxu0 }
  0xf3   :  { %327 = vmatpush3.bf16.xpose.msra.mxu1 %v202_v56  ;;  %v169_v10 = vadd.f32 %v275_v28, %v168_v9  ;;  %v321_v11 = vpop.f32.mrb[14].mxu0 }
  0xf4   :  { %328 = vmatprep.subr.bf16.mxu1 %v376_v25  ;;  %v197_v12 = vmax.f32 %v177_v8, 0.0  ;;  %v180_v13 = vadd.f32 %v321_v11, %v275_v28  ;;  %v171_v14 = vpop.f32.mrb[15].mxu0 }
  0xf5   :  { %v195_v15 = vmax.f32 %v169_v10, 0.0  ;;  %v172_v16 = vadd.f32 %v275_v28, %v171_v14 }
  0xf6   :  { %v198_v17 = vmax.f32 %v180_v13, 0.0 }
  0xf7   :  { %v196_v18 = vmax.f32 %v172_v16, 0.0 }
  0xf8   :  { %v207_v19 = vpack.c.bf16 %v198_v17, %v197_v12 }
  0xf9   :  { %v206_v20 = vpack.c.bf16 %v196_v18, %v195_v15 }
  0xfb   :  { %329 = vmatpush3.bf16.xpose.msra.mxu1 %v203_v55 }
  0xfc   :  { %330 = vmatprep.subr.bf16.mxu1 %v376_v25 }
 0x103   :  { %331 = vmatpush3.bf16.xpose.msra.mxu1 %v204_v6 }
 0x104   :  { %332 = vmatprep.subr.bf16.mxu1 %v376_v25 }
 0x10b   :  { %333 = vmatpush3.bf16.xpose.msra.mxu1 %v205_v5 }
 0x10c   :  { %334 = vmatprep.subr.bf16.mxu1 %v376_v25 }
 0x113   :  { %335 = vmatpush3.bf16.xpose.msra.mxu1 %v206_v20 }
 0x114   :  { %336 = vmatprep.subr.bf16.mxu1 %v376_v25 }
 0x11b   :  { %337 = vmatpush3.bf16.xpose.msra.mxu1 %v207_v19 }
 0x122   :  { %339 = vmatmul.mubr.bf16.vlgmr.msra.gmra.mrb[0].mxu1 %v199_v21 }
 0x1f5   :  { %v248_v23 = vpop.f32.mrb[0].mxu1 }
 0x1f6   :  { %v249_v24 = vadd.f32 %v248_v23, %v212_v22  ;;  %v340_v26 = vpop.f32.mrb[1].mxu1 }
 0x1f7   :  { %v251_v27 = vpop.f32.mrb[2].mxu1 }
 0x1f8   :  { %v285_v28 = vmul.f32 -1.442695, %v249_v24  ;;  %v341_v29 = vpop.f32.mrb[3].mxu1 }
 0x1fa   :  { %348 = vpow2.f32 %v285_v28 }
 0x204   :  { %v349_v30 = vpop.eup %348 }
 0x205   :  { %v257_v31 = vadd.f32 1.0, %v349_v30 }
 0x207   :  { %350 = vrcp.f32 %v257_v31 }
 0x211   :  { %v351_v25 = vpop.eup %350 }
 0x212   :  { %260 = vst [vmem:[#allocation2] sm:$0xff] %v351_v25 }
 0x213   :  { %363 = shalt.err (!%p360_p4)
}
 0x214   :  { %s364_s7 = scalar_lea.hbm %s504_s5, 128 }
 0x215   :  { %p365_p5 = scmp.ne.s32.totalorder %s504_s5, %s364_s7  ;;  %p368_p6 = scmp.lt.u32.totalorder %s364_s7, %s504_s5 }
 0x217   :  { %p370_p7 = pnand %p368_p6, %p365_p5 }
 0x219   :  { %373 = shalt.err (!%p370_p7)
}
 0x21a   :  { %270 = dma.vmem_to_hbm [thread:$0]  %s268_s29, 128, %s504_s5, [#allocation3]  }
 0x21b   :  { %374 = dma.done.wait [#allocation3], 128  }
 0x21c   :  { %375 = vsyncadd [#allocation3], 4294967168 }
 0x21d   :  { %274 = vsyncpa [#allocation3], 1 }

</bundles_post_ra>
